<compile_context>
chip_gen: v7x
topology: tpu7x:2x2x1
jax: 0.10.0
libtpu: 0.0.40
codegen_flags: <defaults>
</compile_context>

<pallas_src>
import functools

import jax
import jax.numpy as jnp
from jax.experimental import pallas as pl
from jax.experimental.pallas import tpu as pltpu


def _conv_ps_kernel(x_ref, r_ref, b_ref, tmask_ref, bmask_ref, o_ref, *, TH, WC):
    """One row band: TH flattened (n*H + h) rows -> TH pixel-shuffled out rows.

    x_ref     : (N*H + 2, WC)  flattened NHWC rows; one zero row above/below.
    r_ref     : (3*WC, M)      banded weights; row groups ky = 0, 1, 2.
    b_ref     : (1, M)         f32 bias, (i, w, j, c) output-column order.
    tmask_ref : (TH, 1)        0 where the ky=0 tap would cross an image top.
    bmask_ref : (TH, 1)        0 where the ky=2 tap would cross an image bottom.
    o_ref     : (TH, M)        output band, column order (i, w, j, c).
    """
    t = pl.program_id(0)
    h0 = pl.multiple_of(t * TH, TH)          # band start, in padded-row coords

    # Three vertically shifted views of the band (ky = 0, 1, 2).  Cross-image
    # taps are zeroed by the masks; the flattened-array edges hit the explicit
    # zero rows of x_ref.  No im2row copy, no scratch zero-fill.
    top = x_ref[pl.ds(h0, TH), :] * tmask_ref[...]
    mid = x_ref[pl.ds(h0 + 1, TH), :]
    bot = x_ref[pl.ds(h0 + 2, TH), :] * bmask_ref[...]

    # Conv (all 9 taps) + pixel shuffle == three accumulating MXU matmuls whose
    # result is already the lane-dense, pixel-shuffled output band.
    acc = jnp.dot(top, r_ref[0:WC, :], preferred_element_type=jnp.float32)
    acc += jnp.dot(mid, r_ref[WC:2 * WC, :], preferred_element_type=jnp.float32)
    acc += jnp.dot(bot, r_ref[2 * WC:3 * WC, :], preferred_element_type=jnp.float32)
    o_ref[...] = (acc + b_ref[...]).astype(o_ref.dtype)


def _pack_banded_weights(weight_oihw, bias, W, compute_dtype):
    """Repack (Cout*4, Cin, 3, 3) conv weights into a banded matrix R so that
    LHS @ R (LHS = rows of the input, three ky-shifted copies) directly yields
    the pixel-shuffled output rows in (i, w, j, c) order.  Taps that fall on
    horizontally padded columns have no rows in R (their input is zero), so no
    width gutters are needed on the LHS."""
    Co4, Cin, _, _ = weight_oihw.shape
    Cout = Co4 // 4
    # w6[ky, kx, cin, i, j, c] = weight[c*4 + 2*i + j, cin, ky, kx]
    w6 = weight_oihw.reshape(Cout, 2, 2, Cin, 3, 3).astype(jnp.float32)
    w6 = jnp.transpose(w6, (4, 5, 3, 1, 2, 0))
    # sel[kx, v, w] = 1 iff input column v feeds output column w through tap kx
    kx = jnp.arange(3)[:, None, None]
    v = jnp.arange(W)[None, :, None]
    w = jnp.arange(W)[None, None, :]
    sel = (v == w + kx - 1).astype(jnp.float32)
    # R[(ky, v, cin), (i, w, j, c)]
    r7 = jnp.einsum("xvw,yxdijc->yvdiwjc", sel, w6)
    R = r7.reshape(3 * W * Cin, 4 * W * Cout).astype(compute_dtype)
    # bias in the same (i, w, j, c) output order; kept f32 (added post-matmul).
    b3 = jnp.transpose(bias.reshape(Cout, 2, 2).astype(jnp.float32), (1, 2, 0))
    brow = jnp.broadcast_to(b3[:, None, :, :], (2, W, 2, Cout))
    return R, brow.reshape(1, 4 * W * Cout)


def _pick_band(nh, cap=128):
    """Largest band TH that divides N*H, is a multiple of 8 (sublane tile), is
    <= cap, and — when possible — leaves >= 2 grid steps (v7x has 2 TCs)."""
    for limit in (min(cap, nh // 2), min(cap, nh)):
        start = limit - limit % 8
        for th in range(start, 7, -8):
            if nh % th == 0:
                return th
    return nh   # awkward sizes: one full-array band (block == full dims)


def pixel_shuffle_upsample_nhwc(x_nhwc, weight_oihw, bias, *,
                                compute_dtype=jnp.bfloat16):
    """NHWC entry point: (N, H, W, Cin) -> (N, 2H, 2W, Cout).  Zero transposes:
    both the input packing and the output unpacking are pure reshapes."""
    N, H, W, Cin = x_nhwc.shape
    Cout = weight_oihw.shape[0] // 4
    WC, M, NH = W * Cin, 4 * W * Cout, N * H

    # Lane-dense flattened rows + one zero row above/below (vertical 'same'
    # padding at the array edges; interior image edges handled by the masks).
    x_rows = x_nhwc.reshape(NH, WC).astype(compute_dtype)
    x_rows = jnp.pad(x_rows, ((1, 1), (0, 0)))

    R, brow = _pack_banded_weights(weight_oihw, bias, W, compute_dtype)

    # Row-validity masks: zero the ky=0 / ky=2 tap on image top / bottom rows
    # (lets a band span several images when H is small, per review).
    g = jnp.arange(NH)
    tmask = (g % H != 0).astype(compute_dtype)[:, None]
    bmask = (g % H != H - 1).astype(compute_dtype)[:, None]

    TH = _pick_band(NH)
    NB = NH // TH

    cdt = jnp.dtype(compute_dtype).itemsize
    odt = jnp.dtype(x_nhwc.dtype).itemsize
    resident = ((NH + 2) * WC + 3 * WC * M + 2 * NH) * cdt + M * 4
    per_band = TH * M * (odt + 4) + 3 * TH * WC * cdt
    vmem_limit = int(min(96 << 20, max(32 << 20, 3 * (resident + per_band))))

    out_rows = pl.pallas_call(
        functools.partial(_conv_ps_kernel, TH=TH, WC=WC),
        out_shape=jax.ShapeDtypeStruct((NH, M), x_nhwc.dtype),
        grid_spec=pltpu.PrefetchScalarGridSpec(
            num_scalar_prefetch=0,
            grid=(NB,),
            in_specs=[
                pl.BlockSpec((NH + 2, WC), lambda t: (0, 0)),   # resident input
                pl.BlockSpec((3 * WC, M), lambda t: (0, 0)),    # banded weights
                pl.BlockSpec((1, M), lambda t: (0, 0)),         # bias row
                pl.BlockSpec((TH, 1), lambda t: (t, 0)),        # top-tap mask
                pl.BlockSpec((TH, 1), lambda t: (t, 0)),        # bottom-tap mask
            ],
            out_specs=pl.BlockSpec((TH, M), lambda t: (t, 0)),
        ),
        compiler_params=pltpu.CompilerParams(
            dimension_semantics=("parallel",),
            vmem_limit_bytes=vmem_limit,
        ),
        cost_estimate=pl.CostEstimate(
            flops=2 * NH * 3 * WC * M,   # banded-matmul flops (~W/3 x true conv)
            transcendentals=0,
            bytes_accessed=((NH + 2) * WC + 3 * WC * M + 2 * NH) * cdt
                           + M * 4 + NH * M * odt,
        ),
    )(x_rows, R, brow, tmask, bmask)

    # (NH, [i, w, j, c]) == (N, H, 2, W, 2, Cout) -> NHWC: lossless reshape.
    return out_rows.reshape(N, 2 * H, 2 * W, Cout)


@functools.partial(jax.jit, static_argnames=("compute_dtype",))
def pixel_shuffle_upsample(x_nchw, weight_oihw, bias, *,
                           compute_dtype=jnp.bfloat16):
    """PyTorch-parity wrapper: (N, Cin, H, W) -> (N, Cout, 2H, 2W) in NCHW.
    The transposes here exist only for NCHW parity; use the _nhwc entry point
    to skip them entirely when the surrounding model is NHWC."""
    x_nhwc = jnp.transpose(x_nchw, (0, 2, 3, 1))
    y = pixel_shuffle_upsample_nhwc(x_nhwc, weight_oihw, bias,
                                    compute_dtype=compute_dtype)
    return jnp.transpose(y, (0, 3, 1, 2))


if __name__ == "__main__":
    key = jax.random.PRNGKey(0)
    k_x, k_w, k_b = jax.random.split(key, 3)

    N, Cin, H, W = 2, 4, 16, 16
    Cout = 4  # out_channels; conv produces Cout*4 = 16 channels

    x = jax.random.normal(k_x, (N, Cin, H, W), dtype=jnp.float32)
    weight = jax.random.normal(k_w, (Cout * 4, Cin, 3, 3), dtype=jnp.float32) * 0.1
    bias = jax.random.normal(k_b, (Cout * 4,), dtype=jnp.float32) * 0.1

    # Reference: XLA conv + manual pixel shuffle.
    conv_ref = jax.lax.conv_general_dilated(
        x, weight, window_strides=(1, 1), padding="SAME",
        dimension_numbers=("NCHW", "OIHW", "NCHW"))
    conv_ref = conv_ref + bias[None, :, None, None]
    ref = conv_ref.reshape(N, Cout, 2, 2, H, W)
    ref = jnp.transpose(ref, (0, 1, 4, 2, 5, 3)).reshape(N, Cout, 2 * H, 2 * W)

    # f32-compute path: tight tolerance (proves the banded-R / mask math).
    out_f32 = pixel_shuffle_upsample(x, weight, bias, compute_dtype=jnp.float32)
    out_f32 = jax.block_until_ready(out_f32)
    assert out_f32.shape == (N, Cout, 2 * H, 2 * W), out_f32.shape
    assert jnp.allclose(out_f32, ref, atol=5e-4, rtol=5e-4)

    # Default bf16-operand MXU path: looser tolerance for bf16 input rounding.
    out_bf16 = jax.block_until_ready(pixel_shuffle_upsample(x, weight, bias))
    assert out_bf16.shape == (N, Cout, 2 * H, 2 * W), out_bf16.shape
    assert jnp.allclose(out_bf16, ref, atol=3e-2, rtol=3e-2)

    print("KERNEL_OK")
</pallas_src>

<mosaic_0001>
module attributes {stable_mosaic.version = 11 : i64} {
  func.func @_conv_ps_kernel(%arg0: i32, %arg1: memref<34x64xf32, #tpu.memory_space<vmem>>, %arg2: memref<192x256xf32, #tpu.memory_space<vmem>>, %arg3: memref<1x256xf32, #tpu.memory_space<vmem>>, %arg4: memref<16x1xf32, #tpu.memory_space<vmem>>, %arg5: memref<16x1xf32, #tpu.memory_space<vmem>>, %arg6: memref<16x256xf32, #tpu.memory_space<vmem>>) attributes {dimension_semantics = [#tpu.dimension_semantics<parallel>], iteration_bounds = array<i64: 2>, scalar_prefetch = 0 : i64, scratch_operands = 0 : i64, tpu.core_type = #tpu.core_type<tc>, window_params = [{pipeline_mode = #tpu.pipeline_mode<synchronous>, transform_indices = @transform_0, window_bounds = array<i64: 34, 64>}, {pipeline_mode = #tpu.pipeline_mode<synchronous>, transform_indices = @transform_1, window_bounds = array<i64: 192, 256>}, {pipeline_mode = #tpu.pipeline_mode<synchronous>, transform_indices = @transform_2, window_bounds = array<i64: 1, 256>}, {transform_indices = @transform_3, window_bounds = array<i64: 16, 1>}, {transform_indices = @transform_4, window_bounds = array<i64: 16, 1>}, {transform_indices = @transform_5, window_bounds = array<i64: 16, 256>}]} {
    %c16_i32 = arith.constant 16 : i32
    %0 = arith.muli %arg0, %c16_i32 : i32
    %1 = tpu.assume_multiple %0, 16 : i32
    %2 = arith.index_cast %1 : i32 to index
    %c0 = arith.constant 0 : index
    %3 = vector.load %arg1[%2, %c0] : memref<34x64xf32, #tpu.memory_space<vmem>>, vector<16x64xf32>
    %c0_0 = arith.constant 0 : index
    %c0_1 = arith.constant 0 : index
    %4 = vector.load %arg4[%c0_0, %c0_1] : memref<16x1xf32, #tpu.memory_space<vmem>>, vector<16x1xf32>
    %5 = vector.broadcast %4 : vector<16x1xf32> to vector<16x64xf32>
    %6 = arith.mulf %3, %5 : vector<16x64xf32>
    %c1_i32 = arith.constant 1 : i32
    %7 = arith.addi %1, %c1_i32 : i32
    %8 = arith.index_cast %7 : i32 to index
    %c0_2 = arith.constant 0 : index
    %9 = vector.load %arg1[%8, %c0_2] : memref<34x64xf32, #tpu.memory_space<vmem>>, vector<16x64xf32>
    %c2_i32 = arith.constant 2 : i32
    %10 = arith.addi %1, %c2_i32 : i32
    %11 = arith.index_cast %10 : i32 to index
    %c0_3 = arith.constant 0 : index
    %12 = vector.load %arg1[%11, %c0_3] : memref<34x64xf32, #tpu.memory_space<vmem>>, vector<16x64xf32>
    %c0_4 = arith.constant 0 : index
    %c0_5 = arith.constant 0 : index
    %13 = vector.load %arg5[%c0_4, %c0_5] : memref<16x1xf32, #tpu.memory_space<vmem>>, vector<16x1xf32>
    %14 = vector.broadcast %13 : vector<16x1xf32> to vector<16x64xf32>
    %15 = arith.mulf %12, %14 : vector<16x64xf32>
    %c0_6 = arith.constant 0 : index
    %c0_7 = arith.constant 0 : index
    %16 = vector.load %arg2[%c0_6, %c0_7] : memref<192x256xf32, #tpu.memory_space<vmem>>, vector<64x256xf32>
    %cst = arith.constant dense<0.000000e+00> : vector<16x256xf32>
    %17 = tpu.matmul %6, %16, %cst {dimension_numbers = #tpu.dot_dimension_numbers<[1], [0], [0], [1], [0, 0, 1, 1], [], []>} : vector<16x64xf32>, vector<64x256xf32>, vector<16x256xf32> -> vector<16x256xf32>
    %c64 = arith.constant 64 : index
    %c0_8 = arith.constant 0 : index
    %18 = vector.load %arg2[%c64, %c0_8] : memref<192x256xf32, #tpu.memory_space<vmem>>, vector<64x256xf32>
    %cst_9 = arith.constant dense<0.000000e+00> : vector<16x256xf32>
    %19 = tpu.matmul %9, %18, %cst_9 {dimension_numbers = #tpu.dot_dimension_numbers<[1], [0], [0], [1], [0, 0, 1, 1], [], []>} : vector<16x64xf32>, vector<64x256xf32>, vector<16x256xf32> -> vector<16x256xf32>
    %20 = arith.addf %17, %19 : vector<16x256xf32>
    %c128 = arith.constant 128 : index
    %c0_10 = arith.constant 0 : index
    %21 = vector.load %arg2[%c128, %c0_10] : memref<192x256xf32, #tpu.memory_space<vmem>>, vector<64x256xf32>
    %cst_11 = arith.constant dense<0.000000e+00> : vector<16x256xf32>
    %22 = tpu.matmul %15, %21, %cst_11 {dimension_numbers = #tpu.dot_dimension_numbers<[1], [0], [0], [1], [0, 0, 1, 1], [], []>} : vector<16x64xf32>, vector<64x256xf32>, vector<16x256xf32> -> vector<16x256xf32>
    %23 = arith.addf %20, %22 : vector<16x256xf32>
    %c0_12 = arith.constant 0 : index
    %c0_13 = arith.constant 0 : index
    %24 = vector.load %arg3[%c0_12, %c0_13] : memref<1x256xf32, #tpu.memory_space<vmem>>, vector<1x256xf32>
    %25 = vector.broadcast %24 : vector<1x256xf32> to vector<16x256xf32>
    %26 = arith.addf %23, %25 : vector<16x256xf32>
    %c0_14 = arith.constant 0 : index
    %c0_15 = arith.constant 0 : index
    %27 = vector.load %arg6[%c0_14, %c0_15] : memref<16x256xf32, #tpu.memory_space<vmem>>, vector<16x256xf32>
    tpu.vector_store %arg6[%c0_14, %c0_15], %26 {strides = array<i32>} : memref<16x256xf32, #tpu.memory_space<vmem>>, vector<16x256xf32>,
    return
  }
  func.func @transform_0(%arg0: i32) -> (i32, i32) {
    %c0_i32 = arith.constant 0 : i32
    %c0_i32_0 = arith.constant 0 : i32
    %c0_i32_1 = arith.constant 0 : i32
    return %c0_i32, %c0_i32_0 : i32, i32
  }
  func.func @transform_1(%arg0: i32) -> (i32, i32) {
    %c0_i32 = arith.constant 0 : i32
    %c0_i32_0 = arith.constant 0 : i32
    %c0_i32_1 = arith.constant 0 : i32
    return %c0_i32, %c0_i32_0 : i32, i32
  }
  func.func @transform_2(%arg0: i32) -> (i32, i32) {
    %c0_i32 = arith.constant 0 : i32
    %c0_i32_0 = arith.constant 0 : i32
    %c0_i32_1 = arith.constant 0 : i32
    return %c0_i32, %c0_i32_0 : i32, i32
  }
  func.func @transform_3(%arg0: i32) -> (i32, i32) {
    %c0_i32 = arith.constant 0 : i32
    %c0_i32_0 = arith.constant 0 : i32
    return %arg0, %c0_i32 : i32, i32
  }
  func.func @transform_4(%arg0: i32) -> (i32, i32) {
    %c0_i32 = arith.constant 0 : i32
    %c0_i32_0 = arith.constant 0 : i32
    return %arg0, %c0_i32 : i32, i32
  }
  func.func @transform_5(%arg0: i32) -> (i32, i32) {
    %c0_i32 = arith.constant 0 : i32
    %c0_i32_0 = arith.constant 0 : i32
    return %arg0, %c0_i32 : i32, i32
  }
}

</mosaic_0001>

<bundles_post_ra>
// kernel: pixel_shuffle_upsample.1
= control target key start
LH: loop header
LB: loop body
LE: loop exit
PB: predicated region body
PF: predicated region fallthrough
CT: control target
= control target key end

     0   :  { %s836_s18 = smov 0   ;;  %s1035_s0 = inlined_call_operand.vmem [shape: f32[34,64], index: 0, kind: input, shape index: {}]   ;;  %s1036_s1 = inlined_call_operand.vmem [shape: f32[192,256], index: 1, kind: input, shape index: {}]   ;;  %s1037_s2 = inlined_call_operand.vmem [shape: f32[1,256], index: 2, kind: input, shape index: {}]   ;;  %s1038_s3 = inlined_call_operand.vmem [shape: f32[32,1], index: 3, kind: input, shape index: {}]   ;;  %s1039_s4 = inlined_call_operand.vmem [shape: f32[32,1], index: 4, kind: input, shape index: {}]   ;;  %s1040_s5 = inlined_call_operand.vmem [shape: f32[32,256], index: 5, kind: output, shape index: {}]  }
   0x1 LB: > { %s692_s19 = sadd.s32 4294967295, %s802_s18   ;;  %p696_p0 = scmp.ge.s32.totalorder %s802_s18, 1  ;;  %s802_s18 = sphi %s836_s18, %s15_s18  }
   0x2   : > { %p199_p1 = scmp.lt.s32.totalorder %s802_s18, 3 }
   0x4   : > { %p200_p2 = pnand %p696_p0, %p199_p1 }
   0x5   : > { %s697_s20 = sshll.u32 (!%p200_p2), %s692_s19, 1  ;;  %v309_v0 = vld [vmem:[%s1036_s1 + $0x88] sm:$0xff] (!%p200_p2)  ;;  %v311_v1 = vld [vmem:[%s1036_s1 + $0x98] sm:$0xff] (!%p200_p2)  ;;  %v308_v2 = vld [vmem:[%s1036_s1 + $0x80] sm:$0xff] (!%p200_p2)  ;;  %v804_v3 = vmov (!%p200_p2), 0   ;;  %v805_v13 = vmov (!%p200_p2), 0.0  }
   0x6   : > { %203 = sbr.rel (%p200_p2) target bundleno = 381 (0x17d), region = 40  ;;  %794 = vset.pattern.permute.xlu0 (!%p200_p2), %v804_v3  ;;  %p234_p3 = scmp.lt.s32.totalorder (!%p200_p2), %s697_s20, 3  ;;  %795 = vset.pattern.permute.xlu1 (!%p200_p2), %v804_v3  ;;  %v720_v4 = vpack.c.bf16 (!%p200_p2), %v311_v1, %v309_v0  ;;  %v310_v5 = vld [vmem:[%s1036_s1 + $0x90] sm:$0xff] (!%p200_p2)  ;;  %v313_v6 = vld [vmem:[%s1036_s1 + $0xa8] sm:$0xff] (!%p200_p2)  ;;  %v315_v7 = vld [vmem:[%s1036_s1 + $0xb8] sm:$0xff] (!%p200_p2)  ;;  %vm324_vm0 = vcmask (!%p200_p2), 523264  }
   0x7   : > { %v722_v8 = vpack.c.bf16 (!%p200_p2), %v310_v5, %v308_v2  ;;  %v724_v9 = vpack.c.bf16 (!%p200_p2), %v315_v7, %v313_v6  ;;  %v312_v10 = vld [vmem:[%s1036_s1 + $0xa0] sm:$0xff] (!%p200_p2)  ;;  %v314_v11 = vld [vmem:[%s1036_s1 + $0xb0] sm:$0xff] (!%p200_p2)  ;;  %v317_v12 = vld [vmem:[%s1036_s1 + $0xc8] sm:$0xff] (!%p200_p2)  ;;  %395 = vmatprep.mubr.f32.mxu1 (!%p200_p2), %v805_v13  ;;  %478 = vmatprep.mubr.f32.mxu0 (!%p200_p2), %v805_v13  ;;  %s704_s11 = sshll.u32 (!%p200_p2), %s692_s19, 4 }
   0x8   : > { %721 = vmatprep.subr.bf16.mxu1 (!%p200_p2), %v720_v4  ;;  %v319_v14 = vld [vmem:[%s1036_s1 + $0xd8] sm:$0xff] (!%p200_p2)  ;;  %v726_v15 = vpack.c.bf16 (!%p200_p2), %v314_v11, %v312_v10  ;;  %v293_v16 = vld [vmem:[%s1036_s1 + $0x8] sm:$0xff] (!%p200_p2)  ;;  %v292_v18 = vld [vmem:[%s1036_s1] sm:$0xff] (!%p200_p2)  ;;  %s956_s27 = scalar_lea.vmem (!%p200_p2), %s1035_s0, %s704_s11 }
   0x9   : > { %723 = vmatpush1.bf16.msra.mxu1 (!%p200_p2), %v722_v8  ;;  %v295_v17 = vld [vmem:[%s1036_s1 + $0x18] sm:$0xff] (!%p200_p2)  ;;  %v728_v19 = vpack.c.bf16 (!%p200_p2), %v319_v14, %v317_v12  ;;  %v316_v20 = vld [vmem:[%s1036_s1 + $0xc0] sm:$0xff] (!%p200_p2)  ;;  %v318_v21 = vld [vmem:[%s1036_s1 + $0xd0] sm:$0xff] (!%p200_p2) }
   0xa   : > { %725 = vmatprep.subr.bf16.mxu1 (!%p200_p2), %v724_v9  ;;  %v736_v22 = vpack.c.bf16 (!%p200_p2), %v295_v17, %v293_v16  ;;  %v294_v23 = vld [vmem:[%s1036_s1 + $0x10] sm:$0xff] (!%p200_p2)  ;;  %v321_v25 = vld [vmem:[%s1036_s1 + $0xe8] sm:$0xff] (!%p200_p2)  ;;  %v323_v26 = vld [vmem:[%s1036_s1 + $0xf8] sm:$0xff] (!%p200_p2)  ;;  %v730_v34 = vpack.c.bf16 (!%p200_p2), %v318_v21, %v316_v20 }
   0xb   : > { %v738_v24 = vpack.c.bf16 (!%p200_p2), %v294_v23, %v292_v18  ;;  %v297_v27 = vld [vmem:[%s1036_s1 + $0x28] sm:$0xff] (!%p200_p2)  ;;  %v320_v29 = vld [vmem:[%s1036_s1 + $0xe0] sm:$0xff] (!%p200_p2)  ;;  %v322_v30 = vld [vmem:[%s1036_s1 + $0xf0] sm:$0xff] (!%p200_p2)  ;;  %v732_v38 = vpack.c.bf16 (!%p200_p2), %v323_v26, %v321_v25 }
   0xc   : > { %737 = vmatprep.subr.bf16.mxu0 (!%p200_p2), %v736_v22  ;;  %v299_v31 = vld [vmem:[%s1036_s1 + $0x38] sm:$0xff] (!%p200_p2)  ;;  %v296_v36 = vld [vmem:[%s1036_s1 + $0x20] sm:$0xff] (!%p200_p2)  ;;  %v298_v39 = vld [vmem:[%s1036_s1 + $0x30] sm:$0xff] (!%p200_p2)  ;;  %v734_v47 = vpack.c.bf16 (!%p200_p2), %v322_v30, %v320_v29 }
   0xd   : > { %s1042_s20 = smov (!%p234_p3, %s697_s20), 3  ;;  %727 = vmatpush1.bf16.msra.mxu1 %v726_v15  ;;  %v740_v35 = vpack.c.bf16 %v299_v31, %v297_v27  ;;  %v492_v40 = vld [vmem:[%s1036_s1 + $0x108] sm:$0xff]  ;;  %739 = vmatpush1.bf16.msra.mxu0 %v738_v24  ;;  %v742_v41 = vpack.c.bf16 %v298_v39, %v296_v36  ;;  %v494_v42 = vld [vmem:[%s1036_s1 + $0x118] sm:$0xff]  ;;  %v300_v46 = vld [vmem:[%s1036_s1 + $0x40] sm:$0xff] }
   0xe   : > { %s698_s25 = sshll.u32 %s1042_s20, 3  ;;  %729 = vmatprep.subr.bf16.mxu1 %v728_v19  ;;  %v301_v43 = vld [vmem:[%s1036_s1 + $0x48] sm:$0xff]  ;;  %v303_v44 = vld [vmem:[%s1036_s1 + $0x58] sm:$0xff]  ;;  %v491_v48 = vld [vmem:[%s1036_s1 + $0x100] sm:$0xff]  ;;  %v752_v50 = vpack.c.bf16 %v494_v42, %v492_v40  ;;  %s719_s15 = sshll.u32 %s1042_s20, 4 }
   0xf   : > { %s237_s9 = scalar_lea.vmem %s1038_s3, %s698_s25  ;;  %s243_s21 = scalar_lea.vmem %s1039_s4, %s698_s25  ;;  %741 = vmatprep.subr.bf16.mxu0 %v740_v35  ;;  %v744_v45 = vpack.c.bf16 %v303_v44, %v301_v43  ;;  %v302_v49 = vld [vmem:[%s1036_s1 + $0x50] sm:$0xff]  ;;  %v305_v52 = vld [vmem:[%s1036_s1 + $0x68] sm:$0xff]  ;;  %v307_v53 = vld [vmem:[%s1036_s1 + $0x78] sm:$0xff] }
  0x10   : > { %v256_v28 = vld [vmem:[%s237_s9] sm:$0xff]  ;;  %v257_v33 = vld [vmem:[%s237_s9 + $0x8] sm:$0xff]  ;;  %v493_v51 = vld [vmem:[%s1036_s1 + $0x110] sm:$0xff]  ;;  %v746_v54 = vpack.c.bf16 %v302_v49, %v300_v46  ;;  %v748_v57 = vpack.c.bf16 %v307_v53, %v305_v52 }
  0x11   : > { %260 = vperm.xlu0 %794, %v256_v28   ;;  %v278_v32 = vld [vmem:[%s243_s21] sm:$0xff]  ;;  %v279_v37 = vld [vmem:[%s243_s21 + $0x8] sm:$0xff]  ;;  %731 = vmatpush1.bf16.msra.mxu1 %v730_v34  ;;  %v498_v56 = vld [vmem:[%s1036_s1 + $0x138] sm:$0xff]  ;;  %v754_v61 = vpack.c.bf16 %v493_v51, %v491_v48  ;;  %v596_v34 = vlaneseq  ;;  %s250_s21 = scalar_lea.vmem %s1040_s5, %s719_s15 }
  0x12   : > { %282 = vperm.xlu1 %795, %v278_v32   ;;  %733 = vmatprep.subr.bf16.mxu1 %v732_v38  ;;  %v496_v55 = vld [vmem:[%s1036_s1 + $0x128] sm:$0xff]  ;;  %v304_v58 = vld [vmem:[%s1036_s1 + $0x60] sm:$0xff]  ;;  %v306_v59 = vld [vmem:[%s1036_s1 + $0x70] sm:$0xff] }
  0x13   : > { %743 = vmatpush1.bf16.msra.mxu0 %v742_v41  ;;  %v706_v60 = vld [vmem:[%s956_s27 + $0x1] sm:$0xff]  ;;  %v756_v62 = vpack.c.bf16 %v498_v56, %v496_v55  ;;  %v497_v0 = vld [vmem:[%s1036_s1 + $0x130] sm:$0xff]  ;;  %v750_v1 = vpack.c.bf16 %v306_v59, %v304_v58  ;;  %v502_v3 = vld [vmem:[%s1036_s1 + $0x158] sm:$0xff]  ;;  %v597_v40 = vshrl.u32 %v596_v34, 7 }
  0x14   : > { %745 = vmatprep.subr.bf16.mxu0 %v744_v45  ;;  %v495_v63 = vld [vmem:[%s1036_s1 + $0x120] sm:$0xff]  ;;  %v500_v2 = vld [vmem:[%s1036_s1 + $0x148] sm:$0xff]  ;;  %v501_v8 = vld [vmem:[%s1036_s1 + $0x150] sm:$0xff] }
  0x15   : > { %265 = vperm.xlu0 %794, %v257_v33   ;;  %735 = vmatpush1.bf16.msra.mxu1 %v734_v47  ;;  %v758_v4 = vpack.c.bf16 %v497_v0, %v495_v63  ;;  %v707_v5 = vld [vmem:[%s956_s27 + $0x9] sm:$0xff]  ;;  %v760_v6 = vpack.c.bf16 %v502_v3, %v500_v2  ;;  %v499_v7 = vld [vmem:[%s1036_s1 + $0x140] sm:$0xff]  ;;  %v506_v10 = vld [vmem:[%s1036_s1 + $0x178] sm:$0xff]  ;;  %v598_v42 = vsub.s32 0, %v597_v40  ;;  %v602_v44 = vsub.s32 1, %v597_v40 }
  0x16   : > { %287 = vperm.xlu1 %795, %v279_v37   ;;  %768 = vmatprep.subr.bf16.mxu1 %v752_v50  ;;  %v504_v9 = vld [vmem:[%s1036_s1 + $0x168] sm:$0xff]  ;;  %v762_v11 = vpack.c.bf16 %v501_v8, %v499_v7  ;;  %v503_v14 = vld [vmem:[%s1036_s1 + $0x160] sm:$0xff]  ;;  %v505_v15 = vld [vmem:[%s1036_s1 + $0x170] sm:$0xff] }
  0x17   : > { %747 = vmatpush1.bf16.msra.mxu0 %v746_v54  ;;  %v764_v12 = vpack.c.bf16 %v506_v10, %v504_v9  ;;  %v766_v16 = vpack.c.bf16 %v505_v15, %v503_v14  ;;  %v254_v17 = vld [vmem:[%s956_s27] sm:$0xff]  ;;  %v255_v21 = vld [vmem:[%s956_s27 + $0x8] sm:$0xff] }
  0x18   : > { %711 = vmatmul.mubr.msk.f32.vlgmr.msra.gmra.mrb[0].mxu1 %vm324_vm0, %v706_v60  ;;  %749 = vmatprep.subr.bf16.mxu0 %v748_v57  ;;  %v710_v22 = vld [vmem:[%s956_s27 + $0xa] sm:$0xff]  ;;  %v709_v27 = vld [vmem:[%s956_s27 + $0x2] sm:$0xff]  ;;  %v594_v43 = vld [vmem:[%s1037_s2] sm:$0x3] }
  0x19   : > { %772 = vmatpush1.bf16.msra.mxu1 %v754_v61  ;;  %401 = vmatprep.mubr.f32.mxu1 %v805_v13  ;;  %v599_v45 = vrot.slane %v594_v43, %v598_v42  ;;  %v603_v47 = vrot.slane %v594_v43, %v602_v44 }
  0x1a   : > { %769 = vmatprep.subr.bf16.mxu1 %v756_v62 }
  0x1b   : > { %751 = vmatpush1.bf16.msra.mxu0 %v750_v1 }
  0x1c   : > { %753 = vmatprep.subr.bf16.mxu0 %v752_v50  ;;  %712 = vmatmul.mubr.msk.f32.gmra.mrb[2].mxu1 %vm324_vm0, %v707_v5 }
  0x1d   : > { %773 = vmatpush1.bf16.msra.mxu1 %v758_v4  ;;  %583 = vmatprep.mubr.f32.mxu1 %v805_v13 }
  0x1e   : > { %770 = vmatprep.subr.bf16.mxu1 %v760_v6 }
  0x21   : > { %774 = vmatpush1.bf16.msra.mxu1 %v762_v11 }
  0x22   : > { %771 = vmatprep.subr.bf16.mxu1 %v764_v12 }
  0x25   : > { %775 = vmatpush1.bf16.msra.mxu1 %v766_v16 }
  0x90   : > { %v261_v18 = vpop.permute.xlu0 %260 }
  0x91   : > { %v268_v19 = vmul.f32 %v261_v18, %v254_v17  ;;  %v283_v20 = vpop.permute.xlu1 %282 }
  0x92   : > { %v290_v28 = vmul.f32 %v709_v27, %v283_v20 }
  0x93   : > { %713 = vmatmul.mubr.msk.f32.vlgmr.msra.gmra.mrb[0].mxu0 %vm324_vm0, %v268_v19 }
  0x94   : > { %755 = vmatpush1.bf16.msra.mxu0 %v754_v61  ;;  %v266_v23 = vpop.permute.xlu0 %265  ;;  %484 = vmatprep.mubr.f32.mxu0 %v805_v13 }
  0x95   : > { %v269_v24 = vmul.f32 %v266_v23, %v255_v21  ;;  %v288_v25 = vpop.permute.xlu1 %287  ;;  %757 = vmatprep.subr.bf16.mxu0 %v756_v62 }
  0x96   : > { %v291_v26 = vmul.f32 %v710_v22, %v288_v25 }
  0x97   : > { %714 = vmatmul.mubr.msk.f32.gmra.mrb[2].mxu0 %vm324_vm0, %v269_v24 }
  0x98   : > { %759 = vmatpush1.bf16.msra.mxu0 %v758_v4  ;;  %716 = vmatmul.mubr.msk.f32.vlgmr.msra.gmra.mrb[4].mxu1 %vm324_vm0, %v291_v26 }
  0x99   : > { %761 = vmatprep.subr.bf16.mxu0 %v760_v6  ;;  %577 = vmatprep.mubr.f32.mxu0 %v805_v13 }
  0x9c   : > { %763 = vmatpush1.bf16.msra.mxu0 %v762_v11 }
  0x9d   : > { %765 = vmatprep.subr.bf16.mxu0 %v764_v12 }
  0xa0   : > { %767 = vmatpush1.bf16.msra.mxu0 %v766_v16 }
  0xa3   : > { %715 = vmatmul.mubr.msk.f32.vlgmr.msra.gmra.mrb[0].mxu0 %vm324_vm0, %v290_v28 }
  0xeb   : > { %v397_v29 = vpop.f32.mrb[0].mxu1 }
  0xec   : > { %v399_v30 = vpop.f32.mrb[1].mxu1 }
  0xef   : > { %v403_v31 = vpop.f32.mrb[2].mxu1 }
  0xf0   : > { %v405_v32 = vpop.f32.mrb[3].mxu1 }
 0x16a   : > { %v486_v33 = vpop.f32.mrb[2].mxu0 }
 0x16b   : > { %v487_v35 = vadd.f32 %v486_v33, %v403_v31  ;;  %v488_v36 = vpop.f32.mrb[3].mxu0  ;;  %v585_v37 = vpop.f32.mrb[4].mxu1 }
 0x16c   : > { %v489_v38 = vadd.f32 %v488_v36, %v405_v32  ;;  %v587_v39 = vpop.f32.mrb[5].mxu1 }
 0x16d   : > { %v592_v13 = vadd.f32 %v585_v37, %v487_v35 }
 0x16e   : > { %v593_v41 = vadd.f32 %v587_v39, %v489_v38 }
 0x16f   : > { %v608_v52 = vadd.f32 %v599_v45, %v592_v13 }
 0x170   : > { %v609_v54 = vadd.f32 %v603_v47, %v593_v41 }
 0x171   : > { %612 = vst [vmem:[%s250_s21 + $0x10] sm:$0xff] %v608_v52 }
 0x172   : > { %613 = vst [vmem:[%s250_s21 + $0x18] sm:$0xff] %v609_v54 }
 0x176   : > { %v579_v46 = vpop.f32.mrb[0].mxu0 }
 0x177   : > { %v776_v48 = vadd.f32 %v579_v46, %v397_v29  ;;  %v581_v49 = vpop.f32.mrb[1].mxu0 }
 0x178   : > { %v777_v50 = vadd.f32 %v581_v49, %v399_v30 }
 0x179   : > { %v606_v51 = vadd.f32 %v776_v48, %v599_v45 }
 0x17a   : > { %v607_v53 = vadd.f32 %v777_v50, %v603_v47 }
 0x17b   : > { %610 = vst [vmem:[%s250_s21] sm:$0xff] %v606_v51 }
 0x17c   : > { %611 = vst [vmem:[%s250_s21 + $0x8] sm:$0xff] %v607_v53 }
 0x17d PF: > { %s15_s18 = sadd.s32 1, %s802_s18  }
 0x17e   : > { %p12_p4 = scmp.ge.s32.totalorder %s15_s18, 4  }
 0x180   :  { %14 = sbr.rel (!%p12_p4) target bundleno = 1 (0x1), region = 76 }

</bundles_post_ra>
